<compile_context>
chip_gen: v7x
topology: tpu7x:2x2x1
jax: 0.10.0
libtpu: 0.0.40
codegen_flags: <defaults>
</compile_context>

<pallas_src>
import jax
import jax.numpy as jnp
from jax.experimental import pallas as pl
from jax.experimental.pallas import tpu as pltpu


def _pairs_kernel(obj_ref, out_ref):
    # obj_ref : (1, N, D)        objects for this batch element
    # out_ref : (1, N, N*2*D)    lane-dense slab; row i holds pairs (i, j=0..N-1)
    n = obj_ref.shape[1]
    d = obj_ref.shape[2]
    two_d = 2 * d

    obj = obj_ref[0]                                         # (N, D); row i = objects[b, i]

    # Unrolled at trace time; N (num_objects) is small for this module.
    for j in range(n):
        base = j * two_d
        # pair p = i*N + j  ->  out[b, p] = [objects[b, j], objects[b, i]]
        part_j = jnp.broadcast_to(obj[j:j + 1, :], (n, d))   # obj[j], identical for every row i
        out_ref[0, :, base:base + d] = part_j
        out_ref[0, :, base + d:base + two_d] = obj           # obj[i] lands in row i


def group_objects_into_pairs(objects: jax.Array) -> jax.Array:
    """Pallas implementation of GroupObjectsIntoPairs.forward."""
    B, N, D = objects.shape
    two_d = 2 * D
    itemsize = jnp.dtype(objects.dtype).itemsize

    in_bytes = B * N * D * itemsize
    out_bytes = B * N * N * two_d * itemsize

    # Per-grid-step VMEM: input block + output block, double-buffered, + headroom.
    per_step = (N * D + N * N * two_d) * itemsize
    vmem_limit = int(min(max(4 * per_step + (2 << 20), 8 << 20), 32 << 20))
    # TODO(synk): for very large N the per-batch slab may exceed VMEM; tile the
    # `i` axis with a second grid dimension in that regime.

    lane_dense = pl.pallas_call(
        _pairs_kernel,
        out_shape=jax.ShapeDtypeStruct((B, N, N * two_d), objects.dtype),
        grid_spec=pltpu.PrefetchScalarGridSpec(
            num_scalar_prefetch=0,
            grid=(B,),
            in_specs=[
                pl.BlockSpec((1, N, D), lambda b: (b, 0, 0)),
            ],
            out_specs=pl.BlockSpec((1, N, N * two_d), lambda b: (b, 0, 0)),
        ),
        compiler_params=pltpu.CompilerParams(
            dimension_semantics=("parallel",),
            vmem_limit_bytes=vmem_limit,
        ),
        cost_estimate=pl.CostEstimate(
            flops=0,
            transcendentals=0,
            bytes_accessed=in_bytes + out_bytes,
        ),
    )(objects)

    # Flat-layout-preserving reshape back to the module's (B, N*N, 2*D) view.
    return lane_dense.reshape(B, N * N, two_d)


def _reference(objects: jax.Array) -> jax.Array:
    # Pure-JAX mirror of the PyTorch forward for verification.
    B, N, D = objects.shape
    left = jnp.broadcast_to(objects[:, None, :, :], (B, N, N, D))   # [b,i,j] = obj[b,j]
    right = jnp.broadcast_to(objects[:, :, None, :], (B, N, N, D))  # [b,i,j] = obj[b,i]
    return jnp.concatenate([left, right], axis=3).reshape(B, N * N, 2 * D)


if __name__ == "__main__":
    key = jax.random.PRNGKey(0)
    B, N, D = 2, 8, 32  # batch, num_objects, object_size
    objects = jax.random.normal(key, (B, N, D), dtype=jnp.float32)

    out = group_objects_into_pairs(objects)
    out = jax.block_until_ready(out)

    ref = _reference(objects)
    assert out.shape == (B, N * N, 2 * D), out.shape
    assert jnp.allclose(out, ref), "Pallas output mismatch vs reference"

    print("KERNEL_OK")
</pallas_src>

<mosaic_0001>
module attributes {stable_mosaic.version = 11 : i64} {
  func.func @_pairs_kernel(%arg0: i32, %arg1: memref<1x8x32xf32, #tpu.memory_space<vmem>>, %arg2: memref<1x8x512xf32, #tpu.memory_space<vmem>>) attributes {dimension_semantics = [#tpu.dimension_semantics<parallel>], iteration_bounds = array<i64: 2>, scalar_prefetch = 0 : i64, scratch_operands = 0 : i64, tpu.core_type = #tpu.core_type<tc>, window_params = [{transform_indices = @transform_0, window_bounds = array<i64: 1, 8, 32>}, {transform_indices = @transform_1, window_bounds = array<i64: 1, 8, 512>}]} {
    %c0 = arith.constant 0 : index
    %c0_0 = arith.constant 0 : index
    %c0_1 = arith.constant 0 : index
    %0 = vector.load %arg1[%c0, %c0_0, %c0_1] : memref<1x8x32xf32, #tpu.memory_space<vmem>>, vector<1x8x32xf32>
    %1 = vector.shape_cast %0 : vector<1x8x32xf32> to vector<8x32xf32>
    %2 = vector.extract_strided_slice %1 {offsets = [0, 0], sizes = [1, 32], strides = [1, 1]} : vector<8x32xf32> to vector<1x32xf32>
    %3 = vector.shape_cast %2 : vector<1x32xf32> to vector<1x32xf32>
    %4 = vector.broadcast %3 : vector<1x32xf32> to vector<8x32xf32>
    %c0_2 = arith.constant 0 : index
    %c0_3 = arith.constant 0 : index
    %c0_4 = arith.constant 0 : index
    %5 = vector.load %arg2[%c0_2, %c0_3, %c0_4] : memref<1x8x512xf32, #tpu.memory_space<vmem>>, vector<1x8x32xf32>
    %6 = vector.shape_cast %5 : vector<1x8x32xf32> to vector<8x32xf32>
    %7 = vector.shape_cast %4 : vector<8x32xf32> to vector<1x8x32xf32>
    tpu.vector_store %arg2[%c0_2, %c0_3, %c0_4], %7 {strides = array<i32>} : memref<1x8x512xf32, #tpu.memory_space<vmem>>, vector<1x8x32xf32>,
    %c0_5 = arith.constant 0 : index
    %c0_6 = arith.constant 0 : index
    %c32 = arith.constant 32 : index
    %8 = vector.load %arg2[%c0_5, %c0_6, %c32] : memref<1x8x512xf32, #tpu.memory_space<vmem>>, vector<1x8x32xf32>
    %9 = vector.shape_cast %8 : vector<1x8x32xf32> to vector<8x32xf32>
    %10 = vector.shape_cast %1 : vector<8x32xf32> to vector<1x8x32xf32>
    tpu.vector_store %arg2[%c0_5, %c0_6, %c32], %10 {strides = array<i32>} : memref<1x8x512xf32, #tpu.memory_space<vmem>>, vector<1x8x32xf32>,
    %11 = vector.extract_strided_slice %1 {offsets = [1, 0], sizes = [1, 32], strides = [1, 1]} : vector<8x32xf32> to vector<1x32xf32>
    %12 = vector.shape_cast %11 : vector<1x32xf32> to vector<1x32xf32>
    %13 = vector.broadcast %12 : vector<1x32xf32> to vector<8x32xf32>
    %c0_7 = arith.constant 0 : index
    %c0_8 = arith.constant 0 : index
    %c64 = arith.constant 64 : index
    %14 = vector.load %arg2[%c0_7, %c0_8, %c64] : memref<1x8x512xf32, #tpu.memory_space<vmem>>, vector<1x8x32xf32>
    %15 = vector.shape_cast %14 : vector<1x8x32xf32> to vector<8x32xf32>
    %16 = vector.shape_cast %13 : vector<8x32xf32> to vector<1x8x32xf32>
    tpu.vector_store %arg2[%c0_7, %c0_8, %c64], %16 {strides = array<i32>} : memref<1x8x512xf32, #tpu.memory_space<vmem>>, vector<1x8x32xf32>,
    %c0_9 = arith.constant 0 : index
    %c0_10 = arith.constant 0 : index
    %c96 = arith.constant 96 : index
    %17 = vector.load %arg2[%c0_9, %c0_10, %c96] : memref<1x8x512xf32, #tpu.memory_space<vmem>>, vector<1x8x32xf32>
    %18 = vector.shape_cast %17 : vector<1x8x32xf32> to vector<8x32xf32>
    %19 = vector.shape_cast %1 : vector<8x32xf32> to vector<1x8x32xf32>
    tpu.vector_store %arg2[%c0_9, %c0_10, %c96], %19 {strides = array<i32>} : memref<1x8x512xf32, #tpu.memory_space<vmem>>, vector<1x8x32xf32>,
    %20 = vector.extract_strided_slice %1 {offsets = [2, 0], sizes = [1, 32], strides = [1, 1]} : vector<8x32xf32> to vector<1x32xf32>
    %21 = vector.shape_cast %20 : vector<1x32xf32> to vector<1x32xf32>
    %22 = vector.broadcast %21 : vector<1x32xf32> to vector<8x32xf32>
    %c0_11 = arith.constant 0 : index
    %c0_12 = arith.constant 0 : index
    %c128 = arith.constant 128 : index
    %23 = vector.load %arg2[%c0_11, %c0_12, %c128] : memref<1x8x512xf32, #tpu.memory_space<vmem>>, vector<1x8x32xf32>
    %24 = vector.shape_cast %23 : vector<1x8x32xf32> to vector<8x32xf32>
    %25 = vector.shape_cast %22 : vector<8x32xf32> to vector<1x8x32xf32>
    tpu.vector_store %arg2[%c0_11, %c0_12, %c128], %25 {strides = array<i32>} : memref<1x8x512xf32, #tpu.memory_space<vmem>>, vector<1x8x32xf32>,
    %c0_13 = arith.constant 0 : index
    %c0_14 = arith.constant 0 : index
    %c160 = arith.constant 160 : index
    %26 = vector.load %arg2[%c0_13, %c0_14, %c160] : memref<1x8x512xf32, #tpu.memory_space<vmem>>, vector<1x8x32xf32>
    %27 = vector.shape_cast %26 : vector<1x8x32xf32> to vector<8x32xf32>
    %28 = vector.shape_cast %1 : vector<8x32xf32> to vector<1x8x32xf32>
    tpu.vector_store %arg2[%c0_13, %c0_14, %c160], %28 {strides = array<i32>} : memref<1x8x512xf32, #tpu.memory_space<vmem>>, vector<1x8x32xf32>,
    %29 = vector.extract_strided_slice %1 {offsets = [3, 0], sizes = [1, 32], strides = [1, 1]} : vector<8x32xf32> to vector<1x32xf32>
    %30 = vector.shape_cast %29 : vector<1x32xf32> to vector<1x32xf32>
    %31 = vector.broadcast %30 : vector<1x32xf32> to vector<8x32xf32>
    %c0_15 = arith.constant 0 : index
    %c0_16 = arith.constant 0 : index
    %c192 = arith.constant 192 : index
    %32 = vector.load %arg2[%c0_15, %c0_16, %c192] : memref<1x8x512xf32, #tpu.memory_space<vmem>>, vector<1x8x32xf32>
    %33 = vector.shape_cast %32 : vector<1x8x32xf32> to vector<8x32xf32>
    %34 = vector.shape_cast %31 : vector<8x32xf32> to vector<1x8x32xf32>
    tpu.vector_store %arg2[%c0_15, %c0_16, %c192], %34 {strides = array<i32>} : memref<1x8x512xf32, #tpu.memory_space<vmem>>, vector<1x8x32xf32>,
    %c0_17 = arith.constant 0 : index
    %c0_18 = arith.constant 0 : index
    %c224 = arith.constant 224 : index
    %35 = vector.load %arg2[%c0_17, %c0_18, %c224] : memref<1x8x512xf32, #tpu.memory_space<vmem>>, vector<1x8x32xf32>
    %36 = vector.shape_cast %35 : vector<1x8x32xf32> to vector<8x32xf32>
    %37 = vector.shape_cast %1 : vector<8x32xf32> to vector<1x8x32xf32>
    tpu.vector_store %arg2[%c0_17, %c0_18, %c224], %37 {strides = array<i32>} : memref<1x8x512xf32, #tpu.memory_space<vmem>>, vector<1x8x32xf32>,
    %38 = vector.extract_strided_slice %1 {offsets = [4, 0], sizes = [1, 32], strides = [1, 1]} : vector<8x32xf32> to vector<1x32xf32>
    %39 = vector.shape_cast %38 : vector<1x32xf32> to vector<1x32xf32>
    %40 = vector.broadcast %39 : vector<1x32xf32> to vector<8x32xf32>
    %c0_19 = arith.constant 0 : index
    %c0_20 = arith.constant 0 : index
    %c256 = arith.constant 256 : index
    %41 = vector.load %arg2[%c0_19, %c0_20, %c256] : memref<1x8x512xf32, #tpu.memory_space<vmem>>, vector<1x8x32xf32>
    %42 = vector.shape_cast %41 : vector<1x8x32xf32> to vector<8x32xf32>
    %43 = vector.shape_cast %40 : vector<8x32xf32> to vector<1x8x32xf32>
    tpu.vector_store %arg2[%c0_19, %c0_20, %c256], %43 {strides = array<i32>} : memref<1x8x512xf32, #tpu.memory_space<vmem>>, vector<1x8x32xf32>,
    %c0_21 = arith.constant 0 : index
    %c0_22 = arith.constant 0 : index
    %c288 = arith.constant 288 : index
    %44 = vector.load %arg2[%c0_21, %c0_22, %c288] : memref<1x8x512xf32, #tpu.memory_space<vmem>>, vector<1x8x32xf32>
    %45 = vector.shape_cast %44 : vector<1x8x32xf32> to vector<8x32xf32>
    %46 = vector.shape_cast %1 : vector<8x32xf32> to vector<1x8x32xf32>
    tpu.vector_store %arg2[%c0_21, %c0_22, %c288], %46 {strides = array<i32>} : memref<1x8x512xf32, #tpu.memory_space<vmem>>, vector<1x8x32xf32>,
    %47 = vector.extract_strided_slice %1 {offsets = [5, 0], sizes = [1, 32], strides = [1, 1]} : vector<8x32xf32> to vector<1x32xf32>
    %48 = vector.shape_cast %47 : vector<1x32xf32> to vector<1x32xf32>
    %49 = vector.broadcast %48 : vector<1x32xf32> to vector<8x32xf32>
    %c0_23 = arith.constant 0 : index
    %c0_24 = arith.constant 0 : index
    %c320 = arith.constant 320 : index
    %50 = vector.load %arg2[%c0_23, %c0_24, %c320] : memref<1x8x512xf32, #tpu.memory_space<vmem>>, vector<1x8x32xf32>
    %51 = vector.shape_cast %50 : vector<1x8x32xf32> to vector<8x32xf32>
    %52 = vector.shape_cast %49 : vector<8x32xf32> to vector<1x8x32xf32>
    tpu.vector_store %arg2[%c0_23, %c0_24, %c320], %52 {strides = array<i32>} : memref<1x8x512xf32, #tpu.memory_space<vmem>>, vector<1x8x32xf32>,
    %c0_25 = arith.constant 0 : index
    %c0_26 = arith.constant 0 : index
    %c352 = arith.constant 352 : index
    %53 = vector.load %arg2[%c0_25, %c0_26, %c352] : memref<1x8x512xf32, #tpu.memory_space<vmem>>, vector<1x8x32xf32>
    %54 = vector.shape_cast %53 : vector<1x8x32xf32> to vector<8x32xf32>
    %55 = vector.shape_cast %1 : vector<8x32xf32> to vector<1x8x32xf32>
    tpu.vector_store %arg2[%c0_25, %c0_26, %c352], %55 {strides = array<i32>} : memref<1x8x512xf32, #tpu.memory_space<vmem>>, vector<1x8x32xf32>,
    %56 = vector.extract_strided_slice %1 {offsets = [6, 0], sizes = [1, 32], strides = [1, 1]} : vector<8x32xf32> to vector<1x32xf32>
    %57 = vector.shape_cast %56 : vector<1x32xf32> to vector<1x32xf32>
    %58 = vector.broadcast %57 : vector<1x32xf32> to vector<8x32xf32>
    %c0_27 = arith.constant 0 : index
    %c0_28 = arith.constant 0 : index
    %c384 = arith.constant 384 : index
    %59 = vector.load %arg2[%c0_27, %c0_28, %c384] : memref<1x8x512xf32, #tpu.memory_space<vmem>>, vector<1x8x32xf32>
    %60 = vector.shape_cast %59 : vector<1x8x32xf32> to vector<8x32xf32>
    %61 = vector.shape_cast %58 : vector<8x32xf32> to vector<1x8x32xf32>
    tpu.vector_store %arg2[%c0_27, %c0_28, %c384], %61 {strides = array<i32>} : memref<1x8x512xf32, #tpu.memory_space<vmem>>, vector<1x8x32xf32>,
    %c0_29 = arith.constant 0 : index
    %c0_30 = arith.constant 0 : index
    %c416 = arith.constant 416 : index
    %62 = vector.load %arg2[%c0_29, %c0_30, %c416] : memref<1x8x512xf32, #tpu.memory_space<vmem>>, vector<1x8x32xf32>
    %63 = vector.shape_cast %62 : vector<1x8x32xf32> to vector<8x32xf32>
    %64 = vector.shape_cast %1 : vector<8x32xf32> to vector<1x8x32xf32>
    tpu.vector_store %arg2[%c0_29, %c0_30, %c416], %64 {strides = array<i32>} : memref<1x8x512xf32, #tpu.memory_space<vmem>>, vector<1x8x32xf32>,
    %65 = vector.extract_strided_slice %1 {offsets = [7, 0], sizes = [1, 32], strides = [1, 1]} : vector<8x32xf32> to vector<1x32xf32>
    %66 = vector.shape_cast %65 : vector<1x32xf32> to vector<1x32xf32>
    %67 = vector.broadcast %66 : vector<1x32xf32> to vector<8x32xf32>
    %c0_31 = arith.constant 0 : index
    %c0_32 = arith.constant 0 : index
    %c448 = arith.constant 448 : index
    %68 = vector.load %arg2[%c0_31, %c0_32, %c448] : memref<1x8x512xf32, #tpu.memory_space<vmem>>, vector<1x8x32xf32>
    %69 = vector.shape_cast %68 : vector<1x8x32xf32> to vector<8x32xf32>
    %70 = vector.shape_cast %67 : vector<8x32xf32> to vector<1x8x32xf32>
    tpu.vector_store %arg2[%c0_31, %c0_32, %c448], %70 {strides = array<i32>} : memref<1x8x512xf32, #tpu.memory_space<vmem>>, vector<1x8x32xf32>,
    %c0_33 = arith.constant 0 : index
    %c0_34 = arith.constant 0 : index
    %c480 = arith.constant 480 : index
    %71 = vector.load %arg2[%c0_33, %c0_34, %c480] : memref<1x8x512xf32, #tpu.memory_space<vmem>>, vector<1x8x32xf32>
    %72 = vector.shape_cast %71 : vector<1x8x32xf32> to vector<8x32xf32>
    %73 = vector.shape_cast %1 : vector<8x32xf32> to vector<1x8x32xf32>
    tpu.vector_store %arg2[%c0_33, %c0_34, %c480], %73 {strides = array<i32>} : memref<1x8x512xf32, #tpu.memory_space<vmem>>, vector<1x8x32xf32>,
    return
  }
  func.func @transform_0(%arg0: i32) -> (i32, i32, i32) {
    %c0_i32 = arith.constant 0 : i32
    %c0_i32_0 = arith.constant 0 : i32
    %c0_i32_1 = arith.constant 0 : i32
    return %arg0, %c0_i32, %c0_i32_0 : i32, i32, i32
  }
  func.func @transform_1(%arg0: i32) -> (i32, i32, i32) {
    %c0_i32 = arith.constant 0 : i32
    %c0_i32_0 = arith.constant 0 : i32
    %c0_i32_1 = arith.constant 0 : i32
    return %arg0, %c0_i32, %c0_i32_0 : i32, i32, i32
  }
}

</mosaic_0001>

<bundles_post_ra>
// kernel: tpu_custom_call.1
= control target key start
LH: loop header
LB: loop body
LE: loop exit
PB: predicated region body
PF: predicated region fallthrough
CT: control target
= control target key end

     0   :  { %6 = vsyncpa [#allocation3], 0  ;;  %s650_s0 = inlined_call_operand.hbm [shape: f32[2,8,32], index: 0, kind: input, shape index: {}]   ;;  %s651_s1 = inlined_call_operand.hbm [shape: f32[2,8,512], index: 1, kind: output, shape index: {}]  }
   0x1   :  { %8 = vsyncpa [#allocation3 + $0x1], 0 }
   0x2   :  { %9 = vsyncpa [#allocation4], 0 }
   0x3   :  { %11 = vsyncpa [#allocation4 + $0x1], 0  ;;  %s469_s6 = smov 0   ;;  %s471_s7 = smov 0  }
   0x4   :  { %s473_s8 = smov 0   ;;  %s475_s9 = smov 0  }
   0x5 LB: > { %s490_s10 = sadd.s32 4294967295, %s452_s9   ;;  %s293_s11 = sadd.s32 4294967294, %s452_s9   ;;  %s452_s9 = sphi %s475_s9, %s666_s9   ;;  %s448_s8 = sphi %s473_s8, %s665_s8   ;;  %s444_s7 = sphi %s471_s7, %s664_s7   ;;  %s440_s6 = sphi %s469_s6, %s663_s6  }
   0x6   : > { %s494_s12 = sadd.s32 1, %s452_s9   ;;  %s24_s13 = sadd.s32 1, %s448_s8 }
   0x7   : > { %s21_s14 = ssub.s32 %s452_s9, %s494_s12  ;;  %p31_p0 = scmp.ne.s32.totalorder %s448_s8, %s444_s7 }
   0x8   : > { %p22_p1 = scmp.eq.s32.totalorder %s21_s14, 0  ;;  %p32_p2 = scmp.eq.s32.totalorder %s452_s9, 0 }
   0x9   : > { %p37_p3 = scmp.ne.s32.totalorder %s444_s7, %s440_s6  ;;  %p38_p4 = scmp.eq.s32.totalorder %s490_s10, 0 }
   0xa   : > { %s506_s15 = scalar_select %p22_p1, %s448_s8, %s24_s13  }
   0xb   : > { %p508_p5 = por %p32_p2, %p31_p0  ;;  %p512_p6 = por %p38_p4, %p37_p3 }
   0xc   : > { %p61_p7 = scmp.eq.s32.totalorder %s490_s10, 1  ;;  %p67_p8 = scmp.eq.s32.totalorder %s293_s11, 1 }
   0xd   : > { %p319_p10 = scmp.lt.s32.totalorder %s452_s9, 2  ;;  %s87_s20 = sand.u32 1, %s448_s8  }
   0xe   : > { %p519_p11 = por %p61_p7, %p31_p0  ;;  %p523_p12 = por %p67_p8, %p37_p3 }
   0xf   : > { %s297_s21 = sshll.u32 %s452_s9, 7  ;;  %s296_s22 = sshll.u32 %s87_s20, 3 }
  0x10   : > { %s655_s18 = scalar_select %p519_p11, 1, 0 }
  0x11   : > { %s656_s19 = scalar_select %p523_p12, 1, 0 }
  0x12   : > { %s532_s25 = scalar_lea.hbm %s650_s0, %s297_s21  ;;  %s91_s26 = scalar_lea.vmem [#allocation2], %s296_s22 }
  0x13   : > { %s98_s27 = sshll.u32 %s91_s26, 4  ;;  %p536_p13 = pnand %p319_p10, %p508_p5  ;;  %s540_s27 = int_to_ptr.vmem [resolvable:$true] %s98_s27 }
  0x14   : > { %s88_s29 = scalar_lea.sflag [#allocation3], %s87_s20  ;;  %s356_s30 = scalar_lea.hbm %s532_s25, 128 }
  0x15   : > { %p357_p2 = scmp.ne.s32.totalorder %s532_s25, %s356_s30  ;;  %p358_p3 = pneg %p536_p13 }
  0x16   : > { %s361_s4 = scalar_lea.hbm %s650_s0, 256  ;;  %p362_p5 = scmp.lt.u32.totalorder %s532_s25, %s650_s0 }
  0x17   : > { %p359_p4 = pnand %p358_p3, %p357_p2  ;;  %p363_p8 = scmp.lt.u32.totalorder %s361_s4, %s356_s30 }
  0x18   : > { %p365_p9 = scmp.lt.u32.totalorder %s356_s30, %s532_s25 }
  0x19   : > { %p360_p7 = pneg %p359_p4  ;;  %p364_p10 = por %p363_p8, %p362_p5 }
  0x1b   : > { %p366_p0 = por %p365_p9, %p364_p10 }
  0x1d   : > { %p367_p1 = pnand %p366_p0, %p360_p7 }
  0x1f   : > { %370 = shalt.err (!%p367_p1)
}
  0x20   : > { %s371_s13 = scalar_lea.vmem %s540_s27, 128  ;;  %s454_s14 = smov [#allocation2]  }
  0x21   : > { %p372_p2 = scmp.ne.s32.totalorder %s540_s27, %s371_s13  ;;  %s376_s16 = sshll.u32 %s454_s14, 4  ;;  %s377_s16 = int_to_ptr.vmem [resolvable:$false] %s376_s16 }
  0x22   : > { %s378_s20 = scalar_lea.vmem %s377_s16, 256  ;;  %p379_p11 = scmp.lt.s32.totalorder %s540_s27, %s377_s16 }
  0x23   : > { %p374_p4 = pnand %p372_p2, %p358_p3  ;;  %p380_p5 = scmp.lt.s32.totalorder %s378_s20, %s371_s13 }
  0x25   : > { %p375_p12 = pneg %p374_p4  ;;  %p381_p8 = por %p380_p5, %p379_p11 }
  0x27   : > { %p382_p9 = pnand %p381_p8, %p375_p12 }
  0x29   : > { %385 = shalt.err (!%p382_p9)
}
  0x2a   : > { %314 = dma.hbm_to_vmem [thread:$0]  (!%p536_p13), %s532_s25, 128, %s540_s27, %s88_s29  }
  0x2b   : > { %p658_p0 = scmp.lt.s32.totalorder %s452_s9, 3  ;;  %p659_p1 = scmp.ge.s32.totalorder %s452_s9, 1 }
  0x2d   : > { %p104_p3 = pnand %p659_p1, %p658_p0 }
  0x2e   : > { %s574_s21 = sand.u32 (!%p104_p3), 1, %s444_s7  }
  0x2f   : > { %107 = sbr.rel (%p104_p3) target bundleno = 201 (0xc9), region = 24  ;;  %s299_s22 = sshll.u32 (!%p104_p3), %s574_s21, 3 }
  0x30   : > { %s110_s23 = scalar_lea.sflag (!%p104_p3), [#allocation3], %s574_s21  ;;  %s113_s24 = scalar_lea.vmem (!%p104_p3), [#allocation2], %s299_s22 }
  0x36   : > { %431 = dma.done.wait (%p512_p6), %s110_s23, 128  }
  0x37   : > { %433 = vsyncadd (%p512_p6), %s110_s23, 4294967168  ;;  %v133_v0 = vlaneseq  ;;  %s300_s25 = sshll.u32 %s574_s21, 5  ;;  %v132_v9 = vld [vmem:[%s113_s24] sm:$0xff]  ;;  %s455_s26 = smov 32   ;;  %vm137_vm0 = vcmask 261120   ;;  %vm143_vm1 = vcmask 523520  }
  0x38   : > { %140 = vrot.lane.b32.xlu0 %v132_v9, %s455_s26  ;;  %s456_s17 = smov 64   ;;  %s583_s27 = scalar_lea.vmem [#allocation5], %s300_s25  ;;  %vm153_vm2 = vcmask 785920   ;;  %vm158_vm3 = vcmask 1048320  }
  0x39   : > { %v134_v1 = vshrl.u32 %v133_v0, 7  ;;  %s457_s28 = smov 96   ;;  %s306_s29 = sshll.u32 %s490_s10, 9 }
  0x3a   : > { %s223_s30 = sshll.u32 %s583_s27, 4  ;;  %s602_s4 = scalar_lea.hbm %s651_s1, %s306_s29  ;;  %s604_s30 = int_to_ptr.vmem [resolvable:$true] %s223_s30 }
  0x3b   : > { %v168_v2 = vsub.s32 3, %v134_v1  ;;  %v147_v3 = vsub.s32 1, %v134_v1  ;;  %v135_v4 = vsub.s32 0, %v134_v1  ;;  %v162_v5 = vsub.s32 2, %v134_v1  ;;  %s209_s10 = scalar_lea.sflag [#allocation4], %s574_s21  ;;  %s386_s5 = scalar_lea.vmem %s604_s30, 512 }
  0x3c   : > { %v178_v6 = vsub.s32 4, %v134_v1  ;;  %v194_v7 = vsub.s32 6, %v134_v1  ;;  %v184_v8 = vsub.s32 5, %v134_v1  ;;  %v200_v12 = vsub.s32 7, %v134_v1  ;;  %p387_p6 = scmp.ne.s32.totalorder %s604_s30, %s386_s5  ;;  %p660_p11 = scmp.ne.s32.totalorder %s655_s18, 0 }
  0x3d   : > { %v169_v10 = vrot.slane %v132_v9, %v168_v2  ;;  %v148_v11 = vrot.slane %v132_v9, %v147_v3  ;;  %v136_v13 = vrot.slane %v132_v9, %v135_v4  ;;  %v163_v14 = vrot.slane %v132_v9, %v162_v5  ;;  %s458_s11 = smov [#allocation5]  }
  0x3e   : > { %v179_v15 = vrot.slane %v132_v9, %v178_v6  ;;  %v195_v16 = vrot.slane %v132_v9, %v194_v7  ;;  %v185_v17 = vrot.slane %v132_v9, %v184_v8  ;;  %v201_v18 = vrot.slane %v132_v9, %v200_v12  ;;  %p388_p12 = pnand %p387_p6, %p660_p11  ;;  %s390_s13 = sshll.u32 %s458_s11, 4  ;;  %s391_s13 = int_to_ptr.vmem [resolvable:$false] %s390_s13 }
  0x3f   : > { %171 = vrot.lane.b32.xlu1 %v169_v10, %s456_s17  ;;  %138 = vst.msk [vmem:[%s583_s27] sm:$0xff] %vm137_vm0, %v136_v13  ;;  %164 = vst.msk [vmem:[%s583_s27 + $0x8] sm:$0xff] %vm137_vm0, %v163_v14  ;;  %150 = vrot.lane.b32.xlu0 %v148_v11, %s456_s17  ;;  %s392_s14 = scalar_lea.vmem %s391_s13, 1024  ;;  %p393_p7 = scmp.lt.s32.totalorder %s604_s30, %s391_s13 }
  0x40   : > { %180 = vst.msk [vmem:[%s583_s27 + $0x10] sm:$0xff] %vm137_vm0, %v179_v15  ;;  %196 = vst.msk [vmem:[%s583_s27 + $0x18] sm:$0xff] %vm137_vm0, %v195_v16  ;;  %p389_p13 = pneg %p388_p12  ;;  %p394_p10 = scmp.lt.s32.totalorder %s392_s14, %s386_s5 }
  0x42   : > { %p395_p2 = por %p394_p10, %p393_p7 }
  0x43   : > { %187 = vrot.lane.b32.xlu1 %v185_v17, %s456_s17  ;;  %203 = vrot.lane.b32.xlu0 %v201_v18, %s456_s17 }
  0x44   : > { %p396_p4 = pnand %p395_p2, %p389_p13 }
  0x47   : > { %155 = vrot.lane.b32.xlu1 %v132_v9, %s457_s28 }
  0xaa   : > { %v141_v19 = vpop.permute.xlu0 %140 }
  0xab   : > { %144 = vst.msk [vmem:[%s583_s27] sm:$0xff] %vm143_vm1, %v141_v19  ;;  %165 = vst.msk [vmem:[%s583_s27 + $0x8] sm:$0xff] %vm143_vm1, %v141_v19 }
  0xac   : > { %181 = vst.msk [vmem:[%s583_s27 + $0x10] sm:$0xff] %vm143_vm1, %v141_v19  ;;  %197 = vst.msk [vmem:[%s583_s27 + $0x18] sm:$0xff] %vm143_vm1, %v141_v19 }
  0xb1   : > { %v172_v20 = vpop.permute.xlu1 %171  ;;  %v151_v21 = vpop.permute.xlu0 %150 }
  0xb2   : > { %174 = vst.msk [vmem:[%s583_s27 + $0x8] sm:$0xff] %vm153_vm2, %v172_v20  ;;  %154 = vst.msk [vmem:[%s583_s27] sm:$0xff] %vm153_vm2, %v151_v21 }
  0xb5   : > { %v188_v22 = vpop.permute.xlu1 %187  ;;  %v204_v23 = vpop.permute.xlu0 %203 }
  0xb6   : > { %190 = vst.msk [vmem:[%s583_s27 + $0x10] sm:$0xff] %vm153_vm2, %v188_v22  ;;  %206 = vst.msk [vmem:[%s583_s27 + $0x18] sm:$0xff] %vm153_vm2, %v204_v23 }
  0xb9   : > { %v156_v24 = vpop.permute.xlu1 %155 }
  0xba   : > { %159 = vst.msk [vmem:[%s583_s27] sm:$0xff] %vm158_vm3, %v156_v24  ;;  %175 = vst.msk [vmem:[%s583_s27 + $0x8] sm:$0xff] %vm158_vm3, %v156_v24 }
  0xbb   : > { %191 = vst.msk [vmem:[%s583_s27 + $0x10] sm:$0xff] %vm158_vm3, %v156_v24  ;;  %207 = vst.msk [vmem:[%s583_s27 + $0x18] sm:$0xff] %vm158_vm3, %v156_v24 }
  0xbc   : > { %399 = shalt.err (!%p396_p4)
}
  0xbd   : > { %s400_s16 = scalar_lea.hbm %s602_s4, 512  ;;  %s404_s22 = scalar_lea.hbm %s651_s1, 1024 }
  0xbe   : > { %p401_p5 = scmp.ne.s32.totalorder %s602_s4, %s400_s16  ;;  %p405_p0 = scmp.lt.u32.totalorder %s602_s4, %s651_s1 }
  0xbf   : > { %p406_p1 = scmp.lt.u32.totalorder %s404_s22, %s400_s16  ;;  %p408_p6 = scmp.lt.u32.totalorder %s400_s16, %s602_s4 }
  0xc0   : > { %p402_p8 = pnand %p401_p5, %p660_p11 }
  0xc1   : > { %p407_p3 = por %p406_p1, %p405_p0 }
  0xc2   : > { %p403_p9 = pneg %p402_p8 }
  0xc3   : > { %p409_p12 = por %p408_p6, %p407_p3 }
  0xc5   : > { %p410_p13 = pnand %p409_p12, %p403_p9 }
  0xc7   : > { %413 = shalt.err (!%p410_p13)
}
  0xc8   : > { %309 = dma.vmem_to_hbm [thread:$0]  (%p660_p11), %s604_s30, 512, %s602_s4, %s209_s10  }
  0xc9 PF: > { %s235_s25 = sand.u32 1, %s440_s6   ;;  %p661_p7 = scmp.ne.s32.totalorder %s656_s19, 0 }
  0xca   : > { %p662_p10 = scmp.ge.s32.totalorder %s452_s9, 2  ;;  %s236_s26 = scalar_lea.sflag [#allocation4], %s235_s25 }
  0xcc   : > { %p316_p2 = pnand %p662_p10, %p661_p7 }
  0xce   : > { %435 = dma.done.wait (!%p316_p2), %s236_s26, 512  }
  0xcf   : > { %437 = vsyncadd (!%p316_p2), %s236_s26, 4294966784  ;;  %p14_p4 = scmp.ge.s32.totalorder %s494_s12, 4   ;;  %s663_s6 = smov %s444_s7 }
  0xd0   : > { %s664_s7 = smov %s448_s8  ;;  %s665_s8 = smov %s506_s15 }
  0xd1   : > { %s666_s9 = smov %s494_s12  ;;  %16 = sbr.rel (!%p14_p4) target bundleno = 5 (0x5), region = 69 }
  0xd8   :  { %241 = vsyncpa [#allocation3], 1 }
  0xd9   :  { %243 = vsyncpa [#allocation3 + $0x1], 1 }
  0xda   :  { %244 = vsyncpa [#allocation4], 1 }
  0xdb   :  { %246 = vsyncpa [#allocation4 + $0x1], 1 }

</bundles_post_ra>
